<compile_context>
chip_gen: v7x
topology: tpu7x:2x2x1
jax: 0.10.0
libtpu: 0.0.40
codegen_flags: <defaults>
</compile_context>

<pallas_src>
import functools
import math

import jax
import jax.numpy as jnp
from jax import lax
from jax.experimental import pallas as pl
from jax.experimental.pallas import tpu as pltpu


# ----------------------------- Pallas kernel --------------------------------

def mlp_kernel(x_ref, w1_ref, b1_ref, w2_ref, b2_ref, w3_ref, b3_ref, o_ref,
               *, chunk):
    # x_ref : (tile, in_dim) f32   -- batch along sublanes (as produced upstream)
    # w1_ref: (width, in_dim), b1_ref: (width, 1)
    # w2_ref: (width, width),  b2_ref: (width, 1)
    # w3_ref: (1, width),      b3_ref: (1, 1)
    # o_ref : (1, tile)            -- lane-dense output block
    tile = x_ref.shape[0]
    n_chunks = tile // chunk

    # Weights are tiny (~21 KiB) and resident across the grid; cast once per step.
    w1 = w1_ref[...].astype(jnp.bfloat16)
    w2 = w2_ref[...].astype(jnp.bfloat16)
    w3 = w3_ref[...].astype(jnp.bfloat16)
    b1 = b1_ref[...]
    b2 = b2_ref[...]
    b3 = b3_ref[...]

    def body(c, carry):
        start = pl.multiple_of(c * chunk, chunk)
        # (chunk, in_dim) -> bf16 MXU operand; in-kernel reorientation of the
        # feature axis happens inside dot_general (contract dim 1 with dim 1).
        xb = x_ref[pl.ds(start, chunk), :].astype(jnp.bfloat16)

        # Layer 1: (width, in_dim) x (chunk, in_dim)^T -> (width, chunk)
        h1 = lax.dot_general(w1, xb, (((1,), (1,)), ((), ())),
                             preferred_element_type=jnp.float32)
        h1 = jnp.maximum(h1 + b1, 0.0).astype(jnp.bfloat16)

        # Layer 2: (width, width) @ (width, chunk) -> (width, chunk)
        h2 = jnp.dot(w2, h1, preferred_element_type=jnp.float32)
        h2 = jnp.maximum(h2 + b2, 0.0).astype(jnp.bfloat16)

        # Layer 3: (1, width) @ (width, chunk) -> (1, chunk)
        out = jnp.dot(w3, h2, preferred_element_type=jnp.float32)
        o_ref[:, pl.ds(start, chunk)] = (out + b3).astype(o_ref.dtype)
        return carry

    lax.fori_loop(0, n_chunks, body, 0, unroll=max(1, min(4, n_chunks)))


# ------------------------------ wrapper --------------------------------------

def mlp_forward(x, params, *, tile_n=8192, chunk=256):
    """x: (N, in_dim) float32.  Returns (N,) float32 (matches torch .squeeze())."""
    N, d_in = x.shape
    w1, b1 = params["w1"], params["b1"]   # (width, in_dim), (width, 1)
    w2, b2 = params["w2"], params["b2"]   # (width, width),  (width, 1)
    w3, b3 = params["w3"], params["b3"]   # (1, width),      (1, 1)
    width = w1.shape[0]
    assert w1.shape == (width, d_in)

    def rup(v, m):
        return ((v + m - 1) // m) * m

    # Tile: multiple of the inner chunk, capped by tile_n and by the batch size;
    # shrink so the grid has >= 2 steps whenever N spans more than one chunk
    # (v7x has 2 TensorCores; "parallel" sharding needs >= 2 grid steps).
    tile = min(int(tile_n), rup(N, chunk))
    tile = min(tile, rup(pl.cdiv(N, 2), chunk))
    tile = max(chunk, (tile // chunk) * chunk)

    grid = (pl.cdiv(N, tile),)

    # VMEM actually needed: 2x double-buffered x blocks + 2x output blocks +
    # resident weights; a few MiB, far under v7x's 32 MiB scoped default.
    vmem_need = 2 * tile * d_in * 4 + 2 * tile * 4 + 1 * 1024 * 1024
    vmem_limit = int(min(max(2 * vmem_need, 4 * 1024 * 1024), 32 * 1024 * 1024))

    out = pl.pallas_call(
        functools.partial(mlp_kernel, chunk=chunk),
        out_shape=jax.ShapeDtypeStruct((1, N), jnp.float32),
        grid_spec=pltpu.PrefetchScalarGridSpec(
            num_scalar_prefetch=0,
            grid=grid,
            in_specs=[
                pl.BlockSpec((tile, d_in), lambda i: (i, 0)),     # x (untransposed)
                pl.BlockSpec((width, d_in), lambda i: (0, 0)),    # w1
                pl.BlockSpec((width, 1), lambda i: (0, 0)),       # b1
                pl.BlockSpec((width, width), lambda i: (0, 0)),   # w2
                pl.BlockSpec((width, 1), lambda i: (0, 0)),       # b2
                pl.BlockSpec((1, width), lambda i: (0, 0)),       # w3
                pl.BlockSpec((1, 1), lambda i: (0, 0)),           # b3
            ],
            out_specs=pl.BlockSpec((1, tile), lambda i: (0, i)),
        ),
        compiler_params=pltpu.CompilerParams(
            dimension_semantics=("parallel",),
            vmem_limit_bytes=vmem_limit,
        ),
    )(x, w1, b1, w2, b2, w3, b3)

    return out[0]


# --------------------------- parameter init -----------------------------------

def init_params(key, *, n_levels=16, n_features_per_level=2, n_output_dims=1,
                n_hidden=2, width=64):
    """Deterministic synthetic parameters mirroring torch.nn.Linear defaults.

    Weights kept in torch's (out_features, in_features) layout, which is what
    the kernel consumes directly (h = W @ x^T per chunk).
    """
    del n_hidden  # kernel is specialized to the default n_hidden=2 topology
    in_dim = n_levels * n_features_per_level        # 32
    k1, k1b, k2, k2b, k3, k3b = jax.random.split(key, 6)

    def linear(kw, kb, fan_in, fan_out):
        bound = 1.0 / math.sqrt(fan_in)
        w = jax.random.uniform(kw, (fan_out, fan_in), jnp.float32, -bound, bound)
        b = jax.random.uniform(kb, (fan_out, 1), jnp.float32, -bound, bound)
        return w, b

    w1, b1 = linear(k1, k1b, in_dim, width)
    w2, b2 = linear(k2, k2b, width, width)
    w3, b3 = linear(k3, k3b, width, n_output_dims)

    return dict(w1=w1, b1=b1, w2=w2, b2=b2, w3=w3, b3=b3)


def reference_forward(x, params):
    """Pure-JAX f32 reference mirroring the torch forward (row-major layout)."""
    h = jnp.maximum(x @ params["w1"].T + params["b1"][:, 0], 0.0)
    h = jnp.maximum(h @ params["w2"].T + params["b2"][:, 0], 0.0)
    out = h @ params["w3"].T + params["b3"][:, 0]
    return out[:, 0]


# --------------------------------- main ---------------------------------------

if __name__ == "__main__":
    key = jax.random.PRNGKey(0)
    k_params, k_x = jax.random.split(key)

    N, in_dim = 500, 32          # small, deliberately ragged (exercises masked tail)
    params = init_params(k_params)
    x = jax.random.normal(k_x, (N, in_dim), dtype=jnp.float32)

    y = mlp_forward(x, params)
    y = jax.block_until_ready(y)

    y_ref = reference_forward(x, params)
    assert y.shape == (N,)
    # bf16 MXU operands with f32 accumulation vs. pure-f32 reference.
    assert jnp.allclose(y, y_ref, atol=2e-2, rtol=2e-2)

    print("KERNEL_OK")
</pallas_src>

<mosaic_0001>
module attributes {stable_mosaic.version = 11 : i64} {
  func.func @mlp_kernel(%arg0: i32, %arg1: memref<256x32xf32, #tpu.memory_space<vmem>>, %arg2: memref<64x32xf32, #tpu.memory_space<vmem>>, %arg3: memref<64x1xf32, #tpu.memory_space<vmem>>, %arg4: memref<64x64xf32, #tpu.memory_space<vmem>>, %arg5: memref<64x1xf32, #tpu.memory_space<vmem>>, %arg6: memref<1x64xf32, #tpu.memory_space<vmem>>, %arg7: memref<1x1xf32, #tpu.memory_space<vmem>>, %arg8: memref<1x256xf32, #tpu.memory_space<vmem>>) attributes {dimension_semantics = [#tpu.dimension_semantics<parallel>], iteration_bounds = array<i64: 2>, scalar_prefetch = 0 : i64, scratch_operands = 0 : i64, tpu.core_type = #tpu.core_type<tc>, window_params = [{transform_indices = @transform_0, window_bounds = array<i64: 256, 32>}, {pipeline_mode = #tpu.pipeline_mode<synchronous>, transform_indices = @transform_1, window_bounds = array<i64: 64, 32>}, {pipeline_mode = #tpu.pipeline_mode<synchronous>, transform_indices = @transform_2, window_bounds = array<i64: 64, 1>}, {pipeline_mode = #tpu.pipeline_mode<synchronous>, transform_indices = @transform_3, window_bounds = array<i64: 64, 64>}, {pipeline_mode = #tpu.pipeline_mode<synchronous>, transform_indices = @transform_4, window_bounds = array<i64: 64, 1>}, {pipeline_mode = #tpu.pipeline_mode<synchronous>, transform_indices = @transform_5, window_bounds = array<i64: 1, 64>}, {pipeline_mode = #tpu.pipeline_mode<synchronous>, transform_indices = @transform_6, window_bounds = array<i64: 1, 1>}, {transform_indices = @transform_7, window_bounds = array<i64: 1, 256>}]} {
    %c0 = arith.constant 0 : index
    %c0_0 = arith.constant 0 : index
    %0 = vector.load %arg2[%c0, %c0_0] : memref<64x32xf32, #tpu.memory_space<vmem>>, vector<64x32xf32>
    %1 = arith.truncf %0 : vector<64x32xf32> to vector<64x32xbf16>
    %c0_1 = arith.constant 0 : index
    %c0_2 = arith.constant 0 : index
    %2 = vector.load %arg4[%c0_1, %c0_2] : memref<64x64xf32, #tpu.memory_space<vmem>>, vector<64x64xf32>
    %3 = arith.truncf %2 : vector<64x64xf32> to vector<64x64xbf16>
    %c0_3 = arith.constant 0 : index
    %c0_4 = arith.constant 0 : index
    %4 = vector.load %arg6[%c0_3, %c0_4] : memref<1x64xf32, #tpu.memory_space<vmem>>, vector<1x64xf32>
    %5 = arith.truncf %4 : vector<1x64xf32> to vector<1x64xbf16>
    %c0_5 = arith.constant 0 : index
    %c0_6 = arith.constant 0 : index
    %6 = vector.load %arg3[%c0_5, %c0_6] : memref<64x1xf32, #tpu.memory_space<vmem>>, vector<64x1xf32>
    %c0_7 = arith.constant 0 : index
    %c0_8 = arith.constant 0 : index
    %7 = vector.load %arg5[%c0_7, %c0_8] : memref<64x1xf32, #tpu.memory_space<vmem>>, vector<64x1xf32>
    %c0_9 = arith.constant 0 : index
    %c0_10 = arith.constant 0 : index
    %8 = vector.load %arg7[%c0_9, %c0_10] : memref<1x1xf32, #tpu.memory_space<vmem>>, vector<1x1xf32>
    %c0_i32 = arith.constant 0 : i32
    %c256_i32 = arith.constant 256 : i32
    %9 = arith.muli %c0_i32, %c256_i32 : i32
    %10 = tpu.assume_multiple %9, 256 : i32
    %11 = arith.index_cast %10 : i32 to index
    %c0_11 = arith.constant 0 : index
    %12 = vector.load %arg1[%11, %c0_11] : memref<256x32xf32, #tpu.memory_space<vmem>>, vector<256x32xf32>
    %13 = arith.truncf %12 : vector<256x32xf32> to vector<256x32xbf16>
    %cst = arith.constant dense<0.000000e+00> : vector<64x256xf32>
    %14 = tpu.matmul %1, %13, %cst {dimension_numbers = #tpu.dot_dimension_numbers<[1], [1], [0], [0], [0, 0, 1, 0], [], []>} : vector<64x32xbf16>, vector<256x32xbf16>, vector<64x256xf32> -> vector<64x256xf32>
    %15 = vector.broadcast %6 : vector<64x1xf32> to vector<64x256xf32>
    %16 = arith.addf %14, %15 : vector<64x256xf32>
    %cst_12 = arith.constant 0.000000e+00 : f32
    %17 = vector.broadcast %cst_12 : f32 to vector<64x256xf32>
    %18 = arith.maximumf %16, %17 : vector<64x256xf32>
    %19 = arith.truncf %18 : vector<64x256xf32> to vector<64x256xbf16>
    %cst_13 = arith.constant dense<0.000000e+00> : vector<64x256xf32>
    %20 = tpu.matmul %3, %19, %cst_13 {dimension_numbers = #tpu.dot_dimension_numbers<[1], [0], [0], [1], [0, 0, 1, 1], [], []>} : vector<64x64xbf16>, vector<64x256xbf16>, vector<64x256xf32> -> vector<64x256xf32>
    %21 = vector.broadcast %7 : vector<64x1xf32> to vector<64x256xf32>
    %22 = arith.addf %20, %21 : vector<64x256xf32>
    %cst_14 = arith.constant 0.000000e+00 : f32
    %23 = vector.broadcast %cst_14 : f32 to vector<64x256xf32>
    %24 = arith.maximumf %22, %23 : vector<64x256xf32>
    %25 = arith.truncf %24 : vector<64x256xf32> to vector<64x256xbf16>
    %cst_15 = arith.constant dense<0.000000e+00> : vector<1x256xf32>
    %26 = tpu.matmul %5, %25, %cst_15 {dimension_numbers = #tpu.dot_dimension_numbers<[1], [0], [0], [1], [0, 0, 1, 1], [], []>} : vector<1x64xbf16>, vector<64x256xbf16>, vector<1x256xf32> -> vector<1x256xf32>
    %27 = vector.broadcast %8 : vector<1x1xf32> to vector<1x256xf32>
    %28 = arith.addf %26, %27 : vector<1x256xf32>
    %c0_16 = arith.constant 0 : index
    %29 = arith.index_cast %10 : i32 to index
    %30 = vector.load %arg8[%c0_16, %29] : memref<1x256xf32, #tpu.memory_space<vmem>>, vector<1x256xf32>
    tpu.vector_store %arg8[%c0_16, %29], %28 {strides = array<i32>} : memref<1x256xf32, #tpu.memory_space<vmem>>, vector<1x256xf32>,
    %c1_i32 = arith.constant 1 : i32
    return
  }
  func.func @transform_0(%arg0: i32) -> (i32, i32) {
    %c0_i32 = arith.constant 0 : i32
    %c0_i32_0 = arith.constant 0 : i32
    return %arg0, %c0_i32 : i32, i32
  }
  func.func @transform_1(%arg0: i32) -> (i32, i32) {
    %c0_i32 = arith.constant 0 : i32
    %c0_i32_0 = arith.constant 0 : i32
    %c0_i32_1 = arith.constant 0 : i32
    return %c0_i32, %c0_i32_0 : i32, i32
  }
  func.func @transform_2(%arg0: i32) -> (i32, i32) {
    %c0_i32 = arith.constant 0 : i32
    %c0_i32_0 = arith.constant 0 : i32
    %c0_i32_1 = arith.constant 0 : i32
    return %c0_i32, %c0_i32_0 : i32, i32
  }
  func.func @transform_3(%arg0: i32) -> (i32, i32) {
    %c0_i32 = arith.constant 0 : i32
    %c0_i32_0 = arith.constant 0 : i32
    %c0_i32_1 = arith.constant 0 : i32
    return %c0_i32, %c0_i32_0 : i32, i32
  }
  func.func @transform_4(%arg0: i32) -> (i32, i32) {
    %c0_i32 = arith.constant 0 : i32
    %c0_i32_0 = arith.constant 0 : i32
    %c0_i32_1 = arith.constant 0 : i32
    return %c0_i32, %c0_i32_0 : i32, i32
  }
  func.func @transform_5(%arg0: i32) -> (i32, i32) {
    %c0_i32 = arith.constant 0 : i32
    %c0_i32_0 = arith.constant 0 : i32
    %c0_i32_1 = arith.constant 0 : i32
    return %c0_i32, %c0_i32_0 : i32, i32
  }
  func.func @transform_6(%arg0: i32) -> (i32, i32) {
    %c0_i32 = arith.constant 0 : i32
    %c0_i32_0 = arith.constant 0 : i32
    %c0_i32_1 = arith.constant 0 : i32
    return %c0_i32, %c0_i32_0 : i32, i32
  }
  func.func @transform_7(%arg0: i32) -> (i32, i32) {
    %c0_i32 = arith.constant 0 : i32
    %c0_i32_0 = arith.constant 0 : i32
    return %c0_i32, %arg0 : i32, i32
  }
}

</mosaic_0001>

<bundles_post_ra>
// kernel: tpu_custom_call.1
= control target key start
LH: loop header
LB: loop body
LE: loop exit
PB: predicated region body
PF: predicated region fallthrough
CT: control target
= control target key end

     0   :  { %s1371_s0 = inlined_call_operand.vmem [shape: f32[500,32], index: 0, kind: input, shape index: {}]   ;;  %s1372_s1 = inlined_call_operand.vmem [shape: f32[64,32], index: 1, kind: input, shape index: {}]   ;;  %s1373_s2 = inlined_call_operand.vmem [shape: f32[64,1], index: 2, kind: input, shape index: {}]   ;;  %s1374_s3 = inlined_call_operand.vmem [shape: f32[64,64], index: 3, kind: input, shape index: {}]   ;;  %s1375_s4 = inlined_call_operand.vmem [shape: f32[64,1], index: 4, kind: input, shape index: {}]   ;;  %s1376_s5 = inlined_call_operand.vmem [shape: f32[1,64], index: 5, kind: input, shape index: {}]   ;;  %s1377_s6 = inlined_call_operand.<no memory space> [shape: f32[1,1], index: 6, kind: input, shape index: {}]   ;;  %s1378_s7 = inlined_call_operand.hbm [shape: f32[1,500], index: 7, kind: output, shape index: {}]  }
   0x1   :  { %v12_v0 = vstv %s1377_s6 }
   0x2   :  { %13 = vst [vmem:[#allocation2] sm:$0x1] %v12_v0 }
   0x3   :  { %14 = vsyncpa [#allocation4], 0 }
   0x4   :  { %16 = vsyncpa [#allocation4 + $0x1], 0  ;;  %s1099_s26 = smov 0   ;;  %s1101_s27 = smov 0  }
   0x5   :  { %s1103_s28 = smov 0   ;;  %s1105_s29 = smov 0  }
   0x6 LB: > { %s891_s6 = sadd.s32 4294967295, %s1051_s29   ;;  %s892_s30 = sadd.s32 4294967294, %s1051_s29   ;;  %s1051_s29 = sphi %s1105_s29, %s1384_s29   ;;  %s1047_s28 = sphi %s1103_s28, %s1383_s28   ;;  %s1043_s27 = sphi %s1101_s27, %s1382_s27   ;;  %s1039_s26 = sphi %s1099_s26, %s1381_s26  }
   0x7   : > { %s1122_s8 = sadd.s32 1, %s1051_s29   ;;  %s181_s9 = sadd.s32 1, %s1047_s28 }
   0x8   : > { %s178_s10 = ssub.s32 %s1051_s29, %s1122_s8  ;;  %p191_p0 = scmp.ne.s32.totalorder %s1047_s28, %s1043_s27 }
   0x9   : > { %p179_p1 = scmp.eq.s32.totalorder %s178_s10, 0  ;;  %p192_p2 = scmp.eq.s32.totalorder %s891_s6, 1 }
   0xa   : > { %p197_p3 = scmp.ne.s32.totalorder %s1043_s27, %s1039_s26  ;;  %p198_p4 = scmp.eq.s32.totalorder %s892_s30, 1 }
   0xb   : > { %s1132_s11 = scalar_select %p179_p1, %s1047_s28, %s181_s9  }
   0xc   : > { %p1134_p5 = por %p192_p2, %p191_p0  ;;  %p1138_p6 = por %p198_p4, %p197_p3 }
   0xd   : > { %p895_p7 = scmp.ge.s32.totalorder %s1051_s29, 1  ;;  %p251_p8 = scmp.lt.s32.totalorder %s1051_s29, 3 }
   0xf   : > { %p252_p9 = pnand %p895_p7, %p251_p8 }
  0x10   : > { %s1144_s14 = sshll.u32 (!%p252_p9), %s891_s6, 5  ;;  %v303_v1 = vld [vmem:[%s1372_s1] sm:$0xff] (!%p252_p9)  ;;  %v304_v2 = vld [vmem:[%s1372_s1 + $0x8] sm:$0xff] (!%p252_p9)  ;;  %v1053_v4 = vmov (!%p252_p9), 0   ;;  %vm434_vm0 = vcmask (!%p252_p9), 261120   ;;  %v331_v6 = vld [vmem:[%s1373_s2 + $0x10] sm:$0xff] (!%p252_p9) }
  0x11   : > { %255 = sbr.rel (%p252_p9) target bundleno = 829 (0x33d), region = 48  ;;  %p292_p10 = scmp.lt.s32.totalorder (!%p252_p9), %s1144_s14, 62  ;;  %v1153_v3 = vpack.c.bf16 (!%p252_p9), %v304_v2, %v303_v1  ;;  %987 = vset.pattern.permute.xlu0 (!%p252_p9), %v1053_v4  ;;  %988 = vset.pattern.permute.xlu1 (!%p252_p9), %v1053_v4  ;;  %v329_v5 = vld [vmem:[%s1373_s2] sm:$0xff] (!%p252_p9)  ;;  %v330_v7 = vld [vmem:[%s1373_s2 + $0x8] sm:$0xff] (!%p252_p9)  ;;  %v332_v8 = vld [vmem:[%s1373_s2 + $0x18] sm:$0xff] (!%p252_p9)  ;;  %vm632_vm1 = vcmask (!%p252_p9), 523264  }
  0x12   : > { %677 = vmatprep.mubr.bf16.mxu1 (!%p252_p9), %v1053_v4  ;;  %396 = vperm.xlu0 (!%p252_p9), %987, %v329_v5   ;;  %v333_v9 = vld [vmem:[%s1373_s2 + $0x20] sm:$0xff] (!%p252_p9)  ;;  %v334_v19 = vld [vmem:[%s1373_s2 + $0x28] sm:$0xff] (!%p252_p9)  ;;  %v335_v23 = vld [vmem:[%s1373_s2 + $0x30] sm:$0xff] (!%p252_p9)  ;;  %s284_s30 = sand.u32 (!%p252_p9), 1, %s1043_s27   ;;  %s1329_s18 = scalar_lea.hbm (!%p252_p9), %s1378_s7, %s1144_s14 }
  0x13   : > { %930 = vmatprep.mubr.msk.bf16.mxu0 (!%p252_p9), %vm434_vm0, %v1153_v3  ;;  %406 = vperm.xlu1 (!%p252_p9), %988, %v331_v6   ;;  %v336_v25 = vld [vmem:[%s1373_s2 + $0x38] sm:$0xff] (!%p252_p9)  ;;  %v337_v28 = vld [vmem:[%s1375_s4] sm:$0xff] (!%p252_p9)  ;;  %v338_v31 = vld [vmem:[%s1375_s4 + $0x8] sm:$0xff] (!%p252_p9)  ;;  %s896_s9 = sshll.u32 (!%p252_p9), %s284_s30, 1  ;;  %s819_s19 = scalar_lea.sflag (!%p252_p9), [#allocation4], %s284_s30 }
  0x14   : > { %v339_v34 = vld [vmem:[%s1375_s4 + $0x10] sm:$0xff] (!%p252_p9)  ;;  %v340_v36 = vld [vmem:[%s1375_s4 + $0x18] sm:$0xff] (!%p252_p9)  ;;  %v341_v39 = vld [vmem:[%s1375_s4 + $0x20] sm:$0xff] (!%p252_p9)  ;;  %s286_s10 = scalar_lea.vmem (!%p252_p9), [#allocation3], %s896_s9 }
  0x15   : > { %v342_v42 = vld [vmem:[%s1375_s4 + $0x28] sm:$0xff] (!%p252_p9)  ;;  %v343_v45 = vld [vmem:[%s1375_s4 + $0x30] sm:$0xff] (!%p252_p9)  ;;  %v344_v47 = vld [vmem:[%s1375_s4 + $0x38] sm:$0xff] (!%p252_p9)  ;;  %s833_s15 = sshll.u32 (!%p252_p9), %s286_s10, 4  ;;  %s1331_s15 = int_to_ptr.vmem [resolvable:$true] %s833_s15 }
  0x16   : > { %401 = vperm.xlu0 (!%p252_p9), %987, %v330_v7   ;;  %v345_v50 = vld [vmem:[#allocation2] sm:$0x1] (!%p252_p9)  ;;  %s989_s20 = scalar_lea.vmem (!%p252_p9), %s1331_s15, 32 }
  0x17   : > { %411 = vperm.xlu1 (!%p252_p9), %988, %v332_v8   ;;  %p990_p11 = scmp.ne.s32.totalorder (!%p252_p9), %s1331_s15, %s989_s20 }
  0x18   : > { %s293_s21 = scalar_select %p292_p10, %s1144_s14, 62 }
  0x19   : > { %p991_p12 = pnand %p990_p11, %p1134_p5 }
  0x1a   : > { %s898_s6 = sshll.u32 %s293_s21, 3  ;;  %416 = vperm.xlu0 %987, %v333_v9   ;;  %s1055_s21 = smov [#allocation3]  }
  0x1b   : > { %s1176_s16 = scalar_lea.vmem %s1371_s0, %s898_s6  ;;  %421 = vperm.xlu1 %988, %v334_v19   ;;  %v307_v19 = vld [vmem:[%s1372_s1 + $0x20] sm:$0xff]  ;;  %p992_p13 = pneg %p991_p12 }
  0x1c   : > { %v362_v10 = vld [vmem:[%s1176_s16 + $0x80] sm:$0xff]  ;;  %v363_v11 = vld [vmem:[%s1176_s16 + $0x88] sm:$0xff]  ;;  %v364_v15 = vld [vmem:[%s1176_s16 + $0x90] sm:$0xff]  ;;  %s993_s22 = sshll.u32 %s1055_s21, 4  ;;  %s994_s22 = int_to_ptr.vmem [resolvable:$false] %s993_s22 }
  0x1d   : > { %v346_v12 = vld [vmem:[%s1176_s16] sm:$0xff]  ;;  %v386_v13 = vpack.c.bf16 %v363_v11, %v362_v10  ;;  %v347_v14 = vld [vmem:[%s1176_s16 + $0x8] sm:$0xff]  ;;  %v365_v16 = vld [vmem:[%s1176_s16 + $0x98] sm:$0xff]  ;;  %s995_s23 = scalar_lea.vmem %s994_s22, 64  ;;  %p996_p0 = scmp.lt.s32.totalorder %s1331_s15, %s994_s22 }
  0x1e   : > { %v378_v17 = vpack.c.bf16 %v347_v14, %v346_v12  ;;  %v387_v18 = vpack.c.bf16 %v365_v16, %v364_v15  ;;  %v348_v20 = vld [vmem:[%s1176_s16 + $0x10] sm:$0xff]  ;;  %v349_v21 = vld [vmem:[%s1176_s16 + $0x18] sm:$0xff]  ;;  %v366_v26 = vld [vmem:[%s1176_s16 + $0xa0] sm:$0xff]  ;;  %426 = vperm.xlu0 %987, %v335_v23   ;;  %p997_p1 = scmp.lt.s32.totalorder %s995_s23, %s989_s20 }
  0x1f   : > { %938 = vmatprep.subr.msk.bf16.mxu0 %vm434_vm0, %v386_v13  ;;  %v379_v24 = vpack.c.bf16 %v349_v21, %v348_v20  ;;  %v367_v27 = vld [vmem:[%s1176_s16 + $0xa8] sm:$0xff]  ;;  %431 = vperm.xlu1 %988, %v336_v25   ;;  %v350_v32 = vld [vmem:[%s1176_s16 + $0x20] sm:$0xff]  ;;  %v368_v37 = vld [vmem:[%s1176_s16 + $0xb0] sm:$0xff] }
  0x20   : > { %v448_v22 = vsel %vm434_vm0, %v378_v17, 0  ;;  %v388_v30 = vpack.c.bf16 %v367_v27, %v366_v26  ;;  %v351_v33 = vld [vmem:[%s1176_s16 + $0x28] sm:$0xff]  ;;  %v369_v38 = vld [vmem:[%s1176_s16 + $0xb8] sm:$0xff]  ;;  %v352_v43 = vld [vmem:[%s1176_s16 + $0x30] sm:$0xff]  ;;  %p998_p2 = por %p997_p1, %p996_p0 }
  0x21   : > { %915 = vmatpush3.bf16.xpose.msra.mxu0 %v448_v22  ;;  %v451_v29 = vsel %vm434_vm0, %v379_v24, 0  ;;  %v380_v35 = vpack.c.bf16 %v351_v33, %v350_v32  ;;  %v389_v41 = vpack.c.bf16 %v369_v38, %v368_v37  ;;  %v353_v44 = vld [vmem:[%s1176_s16 + $0x38] sm:$0xff]  ;;  %v370_v48 = vld [vmem:[%s1176_s16 + $0xc0] sm:$0xff]  ;;  %v371_v49 = vld [vmem:[%s1176_s16 + $0xc8] sm:$0xff] }
  0x22   : > { %939 = vmatprep.subr.msk.bf16.mxu0 %vm434_vm0, %v387_v18  ;;  %594 = vperm.xlu0 %987, %v337_v28   ;;  %v381_v46 = vpack.c.bf16 %v353_v44, %v352_v43  ;;  %v390_v52 = vpack.c.bf16 %v371_v49, %v370_v48  ;;  %v354_v53 = vld [vmem:[%s1176_s16 + $0x40] sm:$0xff]  ;;  %v355_v54 = vld [vmem:[%s1176_s16 + $0x48] sm:$0xff]  ;;  %v372_v56 = vld [vmem:[%s1176_s16 + $0xd0] sm:$0xff]  ;;  %p999_p3 = pnand %p998_p2, %p992_p13 }
  0x23   : > { %599 = vperm.xlu1 %988, %v338_v31   ;;  %v454_v40 = vsel %vm434_vm0, %v380_v35, 0  ;;  %v382_v55 = vpack.c.bf16 %v355_v54, %v354_v53  ;;  %v373_v57 = vld [vmem:[%s1176_s16 + $0xd8] sm:$0xff]  ;;  %v356_v60 = vld [vmem:[%s1176_s16 + $0x50] sm:$0xff]  ;;  %v374_v63 = vld [vmem:[%s1176_s16 + $0xe0] sm:$0xff] }
  0x24   : > { %v457_v51 = vsel %vm434_vm0, %v381_v46, 0  ;;  %v391_v59 = vpack.c.bf16 %v373_v57, %v372_v56  ;;  %v357_v61 = vld [vmem:[%s1176_s16 + $0x58] sm:$0xff]  ;;  %v375_v0 = vld [vmem:[%s1176_s16 + $0xe8] sm:$0xff]  ;;  %v358_v5 = vld [vmem:[%s1176_s16 + $0x60] sm:$0xff] }
  0x25   : > { %v460_v58 = vsel %vm434_vm0, %v382_v55, 0  ;;  %v383_v62 = vpack.c.bf16 %v357_v61, %v356_v60  ;;  %v392_v2 = vpack.c.bf16 %v375_v0, %v374_v63  ;;  %v359_v6 = vld [vmem:[%s1176_s16 + $0x68] sm:$0xff]  ;;  %v376_v8 = vld [vmem:[%s1176_s16 + $0xf0] sm:$0xff]  ;;  %v377_v9 = vld [vmem:[%s1176_s16 + $0xf8] sm:$0xff] }
  0x26   : > { %604 = vperm.xlu0 %987, %v339_v34   ;;  %v384_v7 = vpack.c.bf16 %v359_v6, %v358_v5  ;;  %v393_v11 = vpack.c.bf16 %v377_v9, %v376_v8  ;;  %v360_v12 = vld [vmem:[%s1176_s16 + $0x70] sm:$0xff]  ;;  %v361_v13 = vld [vmem:[%s1176_s16 + $0x78] sm:$0xff]  ;;  %v308_v20 = vld [vmem:[%s1372_s1 + $0x28] sm:$0xff] }
  0x27   : > { %609 = vperm.xlu1 %988, %v340_v36   ;;  %v463_v1 = vsel %vm434_vm0, %v383_v62, 0  ;;  %v385_v14 = vpack.c.bf16 %v361_v13, %v360_v12  ;;  %v305_v16 = vld [vmem:[%s1372_s1 + $0x10] sm:$0xff]  ;;  %v306_v17 = vld [vmem:[%s1372_s1 + $0x18] sm:$0xff]  ;;  %v313_v21 = vpack.c.bf16 %v308_v20, %v307_v19 }
  0x28   : > { %v466_v10 = vsel %vm434_vm0, %v384_v7, 0  ;;  %v312_v18 = vpack.c.bf16 %v306_v17, %v305_v16  ;;  %v309_v22 = vld [vmem:[%s1372_s1 + $0x30] sm:$0xff] }
  0x29   : > { %917 = vmatpush3.bf16.xpose.msra.mxu0 %v451_v29  ;;  %v469_v15 = vsel %vm434_vm0, %v385_v14, 0 }
  0x2a   : > { %940 = vmatprep.subr.msk.bf16.mxu0 %vm434_vm0, %v388_v30  ;;  %614 = vperm.xlu0 %987, %v341_v39  }
  0x2b   : > { %619 = vperm.xlu1 %988, %v342_v42  }
  0x2e   : > { %624 = vperm.xlu0 %987, %v343_v45  }
  0x2f   : > { %629 = vperm.xlu1 %988, %v344_v47  }
  0x31   : > { %919 = vmatpush3.bf16.xpose.msra.mxu0 %v454_v40 }
  0x32   : > { %941 = vmatprep.subr.msk.bf16.mxu0 %vm434_vm0, %v389_v41  ;;  %744 = vperm.xlu0 %987, %v345_v50  }
  0x39   : > { %921 = vmatpush3.bf16.xpose.msra.mxu0 %v457_v51 }
  0x3a   : > { %942 = vmatprep.subr.msk.bf16.mxu0 %vm434_vm0, %v390_v52 }
  0x41   : > { %923 = vmatpush3.bf16.xpose.msra.mxu0 %v460_v58 }
  0x42   : > { %943 = vmatprep.subr.msk.bf16.mxu0 %vm434_vm0, %v391_v59 }
  0x49   : > { %925 = vmatpush3.bf16.xpose.msra.mxu0 %v463_v1 }
  0x4a   : > { %944 = vmatprep.subr.msk.bf16.mxu0 %vm434_vm0, %v392_v2 }
  0x51   : > { %927 = vmatpush3.bf16.xpose.msra.mxu0 %v466_v10 }
  0x52   : > { %945 = vmatprep.subr.msk.bf16.mxu0 %vm434_vm0, %v393_v11 }
  0x59   : > { %929 = vmatpush3.bf16.xpose.msra.mxu0 %v469_v15 }
  0x60   : > { %931 = vmatmul.mubr.msk.bf16.vlgmr.msra.gmra.mrb[0].mxu0 %vm434_vm0, %v1153_v3  ;;  %v310_v3 = vld [vmem:[%s1372_s1 + $0x38] sm:$0xff] }
  0x61   : > { %932 = vmatprep.mubr.msk.bf16.mxu0 %vm434_vm0, %v312_v18  ;;  %v314_v23 = vpack.c.bf16 %v310_v3, %v309_v22 }
  0x68   : > { %933 = vmatmul.mubr.msk.bf16.gmra.mrb[4].mxu0 %vm434_vm0, %v312_v18 }
  0x69   : > { %934 = vmatprep.mubr.msk.bf16.mxu0 %vm434_vm0, %v313_v21 }
  0x70   : > { %935 = vmatmul.mubr.msk.bf16.gmra.mrb[8].mxu0 %vm434_vm0, %v313_v21 }
  0x71   : > { %936 = vmatprep.mubr.msk.bf16.mxu0 %vm434_vm0, %v314_v23 }
  0x78   : > { %937 = vmatmul.mubr.msk.bf16.gmra.mrb[12].mxu0 %vm434_vm0, %v314_v23 }
  0x91   : > { %v397_v24 = vpop.permute.xlu0 %396 }
  0x92   : > { %v407_v33 = vpop.permute.xlu1 %406 }
  0x95   : > { %v402_v28 = vpop.permute.xlu0 %401 }
  0x96   : > { %v412_v44 = vpop.permute.xlu1 %411 }
  0x99   : > { %v417_v55 = vpop.permute.xlu0 %416 }
  0x9a   : > { %v422_v60 = vpop.permute.xlu1 %421 }
  0x9d   : > { %v427_v9 = vpop.permute.xlu0 %426 }
  0x9e   : > { %v432_v14 = vpop.permute.xlu1 %431 }
 0x133   : > { %v529_v25 = vpop.f32.mrb[0].mxu0 }
 0x134   : > { %v530_v26 = vadd.f32 %v529_v25, %v397_v24  ;;  %v531_v27 = vpop.f32.mrb[1].mxu0  ;;  %v316_v25 = vld [vmem:[%s1374_s3 + $0x8] sm:$0xff] }
 0x135   : > { %v532_v29 = vadd.f32 %v531_v27, %v397_v24  ;;  %v533_v30 = vpop.f32.mrb[2].mxu0  ;;  %v315_v24 = vld [vmem:[%s1374_s3] sm:$0xff] }
 0x136   : > { %v534_v31 = vadd.f32 %v533_v30, %v402_v28  ;;  %v535_v32 = vpop.f32.mrb[3].mxu0  ;;  %v568_v35 = vmax.f32 %v530_v26, 0.0  ;;  %v323_v27 = vpack.c.bf16 %v316_v25, %v315_v24 }
 0x137   : > { %v536_v34 = vadd.f32 %v535_v32, %v402_v28  ;;  %v569_v37 = vmax.f32 %v532_v29, 0.0  ;;  %v317_v28 = vld [vmem:[%s1374_s3 + $0x10] sm:$0xff]  ;;  %v318_v29 = vld [vmem:[%s1374_s3 + $0x18] sm:$0xff]  ;;  %v320_v32 = vld [vmem:[%s1374_s3 + $0x28] sm:$0xff] }
 0x138   : > { %v570_v36 = vmax.f32 %v534_v31, 0.0  ;;  %v324_v30 = vpack.c.bf16 %v318_v29, %v317_v28  ;;  %v319_v31 = vld [vmem:[%s1374_s3 + $0x20] sm:$0xff] }
 0x139   : > { %v571_v38 = vmax.f32 %v536_v34, 0.0  ;;  %v321_v34 = vld [vmem:[%s1374_s3 + $0x30] sm:$0xff] }
 0x13a   : > { %v584_v39 = vpack.c.bf16 %v570_v36, %v568_v35  ;;  %v322_v35 = vld [vmem:[%s1374_s3 + $0x38] sm:$0xff] }
 0x13b   : > { %v539_v40 = vpop.f32.mrb[4].mxu0  ;;  %v585_v41 = vpack.c.bf16 %v571_v38, %v569_v37  ;;  %v326_v36 = vpack.c.bf16 %v322_v35, %v321_v34  ;;  %v595_v37 = vpop.permute.xlu0 %594 }
 0x13c   : > { %v540_v42 = vadd.f32 %v539_v40, %v407_v33  ;;  %v541_v43 = vpop.f32.mrb[5].mxu0 }
 0x13d   : > { %v542_v45 = vadd.f32 %v541_v43, %v407_v33  ;;  %v543_v46 = vpop.f32.mrb[6].mxu0  ;;  %645 = vmatprep.subr.bf16.mxu1 %v585_v41  ;;  %v325_v33 = vpack.c.bf16 %v320_v32, %v319_v31  ;;  %v600_v41 = vpop.permute.xlu1 %599 }
 0x13e   : > { %v544_v47 = vadd.f32 %v543_v46, %v412_v44  ;;  %v545_v48 = vpop.f32.mrb[7].mxu0  ;;  %646 = vmatpush1.bf16.msra.mxu1 %v584_v39  ;;  %v572_v50 = vmax.f32 %v540_v42, 0.0 }
 0x13f   : > { %v546_v49 = vadd.f32 %v545_v48, %v412_v44  ;;  %v573_v52 = vmax.f32 %v542_v45, 0.0 }
 0x140   : > { %v574_v51 = vmax.f32 %v544_v47, 0.0 }
 0x141   : > { %v575_v53 = vmax.f32 %v546_v49, 0.0 }
 0x142   : > { %v586_v54 = vpack.c.bf16 %v574_v51, %v572_v50 }
 0x143   : > { %v587_v56 = vpack.c.bf16 %v575_v53, %v573_v52  ;;  %v549_v57 = vpop.f32.mrb[8].mxu0  ;;  %v605_v52 = vpop.permute.xlu0 %604 }
 0x144   : > { %v550_v58 = vadd.f32 %v549_v57, %v417_v55  ;;  %v551_v59 = vpop.f32.mrb[9].mxu0 }
 0x145   : > { %v552_v61 = vadd.f32 %v551_v59, %v417_v55  ;;  %v553_v62 = vpop.f32.mrb[10].mxu0  ;;  %647 = vmatprep.subr.bf16.mxu1 %v587_v56  ;;  %v610_v56 = vpop.permute.xlu1 %609 }
 0x146   : > { %v554_v63 = vadd.f32 %v553_v62, %v422_v60  ;;  %v555_v0 = vpop.f32.mrb[11].mxu0  ;;  %648 = vmatpush1.bf16.msra.mxu1 %v586_v54  ;;  %v576_v2 = vmax.f32 %v550_v58, 0.0 }
 0x147   : > { %v556_v1 = vadd.f32 %v555_v0, %v422_v60  ;;  %v577_v6 = vmax.f32 %v552_v61, 0.0 }
 0x148   : > { %v578_v5 = vmax.f32 %v554_v63, 0.0 }
 0x149   : > { %v579_v7 = vmax.f32 %v556_v1, 0.0 }
 0x14a   : > { %v588_v8 = vpack.c.bf16 %v578_v5, %v576_v2  ;;  %v615_v5 = vpop.permute.xlu0 %614 }
 0x14b   : > { %v589_v10 = vpack.c.bf16 %v579_v7, %v577_v6  ;;  %v559_v11 = vpop.f32.mrb[12].mxu0 }
 0x14c   : > { %v560_v12 = vadd.f32 %v559_v11, %v427_v9  ;;  %v561_v13 = vpop.f32.mrb[13].mxu0 }
 0x14d   : > { %v562_v15 = vadd.f32 %v561_v13, %v427_v9  ;;  %v563_v16 = vpop.f32.mrb[14].mxu0  ;;  %649 = vmatprep.subr.bf16.mxu1 %v589_v10  ;;  %v620_v10 = vpop.permute.xlu1 %619 }
 0x14e   : > { %v564_v17 = vadd.f32 %v563_v16, %v432_v14  ;;  %v565_v18 = vpop.f32.mrb[15].mxu0  ;;  %650 = vmatpush1.bf16.msra.mxu1 %v588_v8  ;;  %v580_v20 = vmax.f32 %v560_v12, 0.0 }
 0x14f   : > { %v566_v19 = vadd.f32 %v565_v18, %v432_v14  ;;  %v581_v22 = vmax.f32 %v562_v15, 0.0 }
 0x150   : > { %v582_v21 = vmax.f32 %v564_v17, 0.0 }
 0x151   : > { %v583_v3 = vmax.f32 %v566_v19, 0.0  ;;  %v630_v25 = vpop.permute.xlu1 %629 }
 0x152   : > { %v590_v23 = vpack.c.bf16 %v582_v21, %v580_v20  ;;  %v625_v21 = vpop.permute.xlu0 %624 }
 0x153   : > { %v591_v26 = vpack.c.bf16 %v583_v3, %v581_v22 }
 0x155   : > { %651 = vmatprep.subr.bf16.mxu1 %v591_v26 }
 0x156   : > { %652 = vmatpush1.bf16.msra.mxu1 %v590_v23 }
 0x159   : > { %903 = vmatmul.mubr.msk.bf16.vlgmr.msra.gmra.mrb[0].mxu1 %vm632_vm1, %v323_v27 }
 0x15a   : > { %687 = vmatprep.mubr.bf16.mxu1 %v1053_v4 }
 0x161   : > { %904 = vmatmul.mubr.msk.bf16.gmra.mrb[4].mxu1 %vm632_vm1, %v324_v30 }
 0x162   : > { %697 = vmatprep.mubr.bf16.mxu1 %v1053_v4 }
 0x169   : > { %905 = vmatmul.mubr.msk.bf16.gmra.mrb[8].mxu1 %vm632_vm1, %v325_v33 }
 0x16a   : > { %707 = vmatprep.mubr.bf16.mxu1 %v1053_v4 }
 0x171   : > { %906 = vmatmul.mubr.msk.bf16.gmra.mrb[12].mxu1 %vm632_vm1, %v326_v36  ;;  %v327_v36 = vld [vmem:[%s1376_s5] sm:$0x1] }
 0x172   : > { %786 = vmatprep.mubr.bf16.mxu1 %v1053_v4 }
 0x22c   : > { %v679_v38 = vpop.f32.mrb[0].mxu1 }
 0x22d   : > { %v680_v39 = vadd.f32 %v679_v38, %v595_v37  ;;  %v681_v40 = vpop.f32.mrb[1].mxu1  ;;  %v328_v38 = vpack.c.bf16 %v327_v36, %v327_v36 }
 0x22e   : > { %v682_v42 = vadd.f32 %v681_v40, %v595_v37  ;;  %v683_v43 = vpop.f32.mrb[2].mxu1 }
 0x22f   : > { %v684_v44 = vadd.f32 %v683_v43, %v600_v41  ;;  %v685_v45 = vpop.f32.mrb[3].mxu1  ;;  %v718_v47 = vmax.f32 %v680_v39, 0.0  ;;  %v747_v39 = vlaneseq }
 0x230   : > { %v686_v46 = vadd.f32 %v685_v45, %v600_v41  ;;  %v719_v49 = vmax.f32 %v682_v42, 0.0  ;;  %v1054_v41 = vmov 1966171168  }
 0x231   : > { %v720_v48 = vmax.f32 %v684_v44, 0.0  ;;  %v748_v40 = vshrl.u32 %v747_v39, 7  ;;  %v799_v42 = vunpack.c.l.s4 %v1054_v41  ;;  %v745_v44 = vpop.permute.xlu0 %744  ;;  %vm815_vm2 = vcmp.lt.s32.totalorder %v747_v39, 256 }
 0x232   : > { %v721_v50 = vmax.f32 %v686_v46, 0.0 }
 0x233   : > { %v734_v51 = vpack.c.bf16 %v720_v48, %v718_v47  ;;  %v749_v43 = vsub.s32 0, %v748_v40  ;;  %v800_v45 = vunpack.c.0.s8 %v799_v42 }
 0x234   : > { %v735_v53 = vpack.c.bf16 %v721_v50, %v719_v49  ;;  %v689_v54 = vpop.f32.mrb[4].mxu1 }
 0x235   : > { %v690_v55 = vadd.f32 %v689_v54, %v605_v52  ;;  %v691_v4 = vpop.f32.mrb[5].mxu1  ;;  %v750_v46 = vrot.slane %v745_v44, %v749_v43 }
 0x236   : > { %v692_v57 = vadd.f32 %v691_v4, %v605_v52  ;;  %v693_v58 = vpop.f32.mrb[6].mxu1  ;;  %754 = vmatprep.subr.bf16.mxu1 %v735_v53 }
 0x237   : > { %v694_v59 = vadd.f32 %v693_v58, %v610_v56  ;;  %v695_v60 = vpop.f32.mrb[7].mxu1  ;;  %755 = vmatpush1.bf16.msra.mxu1 %v734_v51  ;;  %v722_v62 = vmax.f32 %v690_v55, 0.0  ;;  %v803_v51 = vsub.s32 %v800_v45, %v748_v40 }
 0x238   : > { %v696_v61 = vadd.f32 %v695_v60, %v610_v56  ;;  %v723_v0 = vmax.f32 %v692_v57, 0.0 }
 0x239   : > { %v724_v63 = vmax.f32 %v694_v59, 0.0 }
 0x23a   : > { %v725_v1 = vmax.f32 %v696_v61, 0.0 }
 0x23b   : > { %v736_v2 = vpack.c.bf16 %v724_v63, %v722_v62 }
 0x23c   : > { %v737_v6 = vpack.c.bf16 %v725_v1, %v723_v0  ;;  %v699_v7 = vpop.f32.mrb[8].mxu1 }
 0x23d   : > { %v700_v8 = vadd.f32 %v699_v7, %v615_v5  ;;  %v701_v9 = vpop.f32.mrb[9].mxu1 }
 0x23e   : > { %v702_v11 = vadd.f32 %v701_v9, %v615_v5  ;;  %v703_v12 = vpop.f32.mrb[10].mxu1  ;;  %756 = vmatprep.subr.bf16.mxu1 %v737_v6 }
 0x23f   : > { %v704_v13 = vadd.f32 %v703_v12, %v620_v10  ;;  %v705_v14 = vpop.f32.mrb[11].mxu1  ;;  %757 = vmatpush1.bf16.msra.mxu1 %v736_v2  ;;  %v726_v16 = vmax.f32 %v700_v8, 0.0 }
 0x240   : > { %v706_v15 = vadd.f32 %v705_v14, %v620_v10  ;;  %v727_v18 = vmax.f32 %v702_v11, 0.0 }
 0x241   : > { %v728_v17 = vmax.f32 %v704_v13, 0.0 }
 0x242   : > { %v729_v19 = vmax.f32 %v706_v15, 0.0 }
 0x243   : > { %v738_v20 = vpack.c.bf16 %v728_v17, %v726_v16 }
 0x244   : > { %v739_v22 = vpack.c.bf16 %v729_v19, %v727_v18  ;;  %v709_v3 = vpop.f32.mrb[12].mxu1 }
 0x245   : > { %v710_v23 = vadd.f32 %v709_v3, %v625_v21  ;;  %v711_v24 = vpop.f32.mrb[13].mxu1 }
 0x246   : > { %v712_v26 = vadd.f32 %v711_v24, %v625_v21  ;;  %v713_v27 = vpop.f32.mrb[14].mxu1  ;;  %758 = vmatprep.subr.bf16.mxu1 %v739_v22 }
 0x247   : > { %v714_v28 = vadd.f32 %v713_v27, %v630_v25  ;;  %v715_v29 = vpop.f32.mrb[15].mxu1  ;;  %759 = vmatpush1.bf16.msra.mxu1 %v738_v20  ;;  %v730_v31 = vmax.f32 %v710_v23, 0.0 }
 0x248   : > { %v716_v30 = vadd.f32 %v715_v29, %v630_v25  ;;  %v731_v33 = vmax.f32 %v712_v26, 0.0 }
 0x249   : > { %v732_v32 = vmax.f32 %v714_v28, 0.0 }
 0x24a   : > { %v733_v34 = vmax.f32 %v716_v30, 0.0 }
 0x24b   : > { %v740_v35 = vpack.c.bf16 %v732_v32, %v730_v31 }
 0x24c   : > { %v741_v37 = vpack.c.bf16 %v733_v34, %v731_v33 }
 0x24e   : > { %760 = vmatprep.subr.bf16.mxu1 %v741_v37 }
 0x24f   : > { %761 = vmatpush1.bf16.msra.mxu1 %v740_v35 }
 0x252   : > { %907 = vmatmul.mubr.msk.bf16.vlgmr.msra.gmra.mrb[16].mxu1 %vm632_vm1, %v328_v38 }
 0x325   : > { %v788_v47 = vpop.f32.mrb[16].mxu1 }
 0x326   : > { %v789_v48 = vadd.f32 %v788_v47, %v750_v46  ;;  %v790_v49 = vpop.f32.mrb[17].mxu1 }
 0x327   : > { %v791_v50 = vadd.f32 %v790_v49, %v750_v46  ;;  %v792_v52 = vpop.f32.mrb[18].mxu1 }
 0x328   : > { %v793_v53 = vpop.f32.mrb[19].mxu1 }
 0x329   : > { %v797_v54 = vcombine.low %v789_v48, %v791_v50 }
 0x32b   : > { %v804_v55 = vrot.slane %v797_v54, %v803_v51 }
 0x32d   : > { %v811_v4 = vrot.slane %v804_v55, %v803_v51 }
 0x32f   : > { %817 = vst.msk [vmem:[%s286_s10] sm:$0x3] %vm815_vm2, %v811_v4 }
 0x330   : > { %1002 = shalt.err (!%p999_p3)
}
 0x331   : > { %s1003_s14 = scalar_lea.hbm %s1329_s18, 32  ;;  %s1007_s6 = scalar_lea.hbm %s1378_s7, 64 }
 0x332   : > { %p1004_p4 = scmp.ne.s32.totalorder %s1329_s18, %s1003_s14  ;;  %p1008_p9 = scmp.lt.u32.totalorder %s1329_s18, %s1378_s7 }
 0x333   : > { %p1009_p10 = scmp.lt.u32.totalorder %s1007_s6, %s1003_s14  ;;  %p1011_p12 = scmp.lt.u32.totalorder %s1003_s14, %s1329_s18 }
 0x334   : > { %p1005_p7 = pnand %p1004_p4, %p1134_p5 }
 0x335   : > { %p1010_p11 = por %p1009_p10, %p1008_p9 }
 0x336   : > { %p1006_p8 = pneg %p1005_p7 }
 0x337   : > { %p1012_p13 = por %p1011_p12, %p1010_p11 }
 0x339   : > { %p1013_p0 = pnand %p1012_p13, %p1006_p8 }
 0x33b   : > { %1016 = shalt.err (!%p1013_p0)
}
 0x33c   : > { %946 = dma.vmem_to_hbm [thread:$0]  (%p1134_p5), %s1331_s15, 32, %s1329_s18, %s819_s19  }
 0x33d PF: > { %p952_p1 = scmp.ge.s32.totalorder %s1051_s29, 2  ;;  %s845_s10 = sand.u32 1, %s1039_s26  }
 0x33e   : > { %s846_s16 = scalar_lea.sflag [#allocation4], %s845_s10 }
 0x33f   : > { %p949_p2 = pnand %p952_p1, %p1138_p6 }
 0x341   : > { %1034 = dma.done.wait (!%p949_p2), %s846_s16, 32  }
 0x342   : > { %1036 = vsyncadd (!%p949_p2), %s846_s16, 4294967264  ;;  %p19_p3 = scmp.ge.s32.totalorder %s1122_s8, 4   ;;  %s1381_s26 = smov %s1043_s27 }
 0x343   : > { %s1382_s27 = smov %s1047_s28  ;;  %s1383_s28 = smov %s1132_s11 }
 0x344   : > { %s1384_s29 = smov %s1122_s8  ;;  %21 = sbr.rel (!%p19_p3) target bundleno = 6 (0x6), region = 83 }
 0x34b   :  { %851 = vsyncpa [#allocation4], 1 }
 0x34c   :  { %853 = vsyncpa [#allocation4 + $0x1], 1 }

</bundles_post_ra>
